<compile_context>
chip_gen: v6e
topology: v6e:2x2x1
jax: 0.10.0
libtpu: 0.0.40
codegen_flags: <defaults>
</compile_context>

<pallas_src>
import functools

import jax
import jax.numpy as jnp
from jax.experimental import pallas as pl
from jax.experimental.pallas import tpu as pltpu


def _round_up(x, m):
    return ((x + m - 1) // m) * m


def _pad_last(x, n_pad):
    pad = n_pad - x.shape[-1]
    if pad == 0:
        return x
    return jnp.pad(x, ((0, 0), (0, pad)))


def _psl_kernel(pref_ref, w1_ref, b1_ref, w2_ref, b2_ref, w3_ref, b3_ref,
                *rest, n_obj, n_var, has_bounds):
    if has_bounds:
        offset_ref, half_rng_ref, out_ref = rest
    else:
        (out_ref,) = rest

    pref = pref_ref[...]              # [TILE_B, n_obj] f32
    w1 = w1_ref[...]                  # [n_obj, H] f32

    # layer 1: Linear(n_obj -> H) + ReLU on the VPU (K = n_obj is tiny; an MXU
    # contraction would pad K up to the full systolic depth for ~2% util).
    h1 = pref[:, 0:1] * w1[0:1, :] + b1_ref[...]
    for j in range(1, n_obj):         # n_obj is static -> unrolled at trace time
        h1 = h1 + pref[:, j:j + 1] * w1[j:j + 1, :]
    h1 = jnp.maximum(h1, 0.0)

    # layer 2: Linear(H -> H) + ReLU (bf16 MXU, f32 accumulate)
    h2 = jnp.dot(h1.astype(jnp.bfloat16), w2_ref[...],
                 preferred_element_type=jnp.float32) + b2_ref[...]
    h2 = jnp.maximum(h2, 0.0)

    # layer 3: Linear(H -> n_var) (bf16 MXU, lane-dense padded N; f32 acc)
    z = jnp.dot(h2.astype(jnp.bfloat16), w3_ref[...],
                preferred_element_type=jnp.float32) + b3_ref[...]
    z = z[:, :n_var]                  # drop padded lanes before the HBM store

    if has_bounds:
        # sigmoid(z)*(ub-lb)+lb  ==  tanh(z/2)*0.5*(ub-lb) + (lb+0.5*(ub-lb))
        out_ref[...] = jnp.tanh(0.5 * z) * half_rng_ref[...] + offset_ref[...]
    else:
        out_ref[...] = z


def prepare_psl(params, lb=None, ub=None):
    """One-time parameter preparation (padding, bf16 casts, bound precompute).

    params: dict with w1[n_obj,H], b1[1,H], w2[H,H], b2[1,H], w3[H,n_var],
            b3[1,n_var]  (weights stored [in, out], i.e. y = x @ W + b)
    lb/ub:  [1, n_var] or None (mirrors `'lb' in dir(problem)`)
    """
    n_obj, H = params["w1"].shape
    n_var = params["w3"].shape[1]
    n_pad = _round_up(n_var, 128)     # lane-dense N for the MXU only
    prep = {
        "w1": params["w1"].astype(jnp.float32),
        "b1": params["b1"].astype(jnp.float32),
        "w2": params["w2"].astype(jnp.bfloat16),
        "b2": params["b2"].astype(jnp.float32),
        "w3": _pad_last(params["w3"], n_pad).astype(jnp.bfloat16),
        "b3": _pad_last(params["b3"], n_pad).astype(jnp.float32),
        "n_obj": n_obj, "H": H, "n_var": n_var, "n_pad": n_pad,
        "has_bounds": lb is not None,
    }
    if lb is not None:
        half_rng = 0.5 * (ub - lb)
        prep["half_rng"] = half_rng.astype(jnp.float32)
        prep["offset"] = (lb + half_rng).astype(jnp.float32)
    return prep


def simple_psl_forward(pref, prep, *, max_tile_b=512):
    """Pallas implementation of SimplePSLModel.forward.

    pref: [B, n_obj] float32
    prep: output of prepare_psl()
    max_tile_b: batch tile cap (512 default; per-step overhead, not VMEM, is
                the limiter, so keep it large on all generations incl. v5e).
    """
    B, n_obj = pref.shape
    H, n_var, n_pad = prep["H"], prep["n_var"], prep["n_pad"]
    has_bounds = prep["has_bounds"]

    # Batch tiling: big tiles amortize the ~0.35 us/step overhead, but keep at
    # least 2 grid steps once the batch is >= 16 so the "parallel" axis can be
    # sharded across both v7x TensorCores.
    b_pad8 = _round_up(max(B, 1), 8)
    tile_b = min(_round_up(max_tile_b, 8), b_pad8)
    if b_pad8 >= 16 and tile_b >= b_pad8:
        tile_b = _round_up((b_pad8 + 1) // 2, 8)
    b_padded = _round_up(b_pad8, tile_b)

    pref_f32 = pref.astype(jnp.float32)
    if b_padded != B:
        pref_f32 = jnp.pad(pref_f32, ((0, b_padded - B), (0, 0)))

    args = [pref_f32, prep["w1"], prep["b1"], prep["w2"], prep["b2"],
            prep["w3"], prep["b3"]]
    in_specs = [
        pl.BlockSpec((tile_b, n_obj), lambda i: (i, 0)),   # pref: tiled over B
        pl.BlockSpec((n_obj, H), lambda i: (0, 0)),        # w1: resident
        pl.BlockSpec((1, H), lambda i: (0, 0)),            # b1
        pl.BlockSpec((H, H), lambda i: (0, 0)),            # w2 (bf16)
        pl.BlockSpec((1, H), lambda i: (0, 0)),            # b2
        pl.BlockSpec((H, n_pad), lambda i: (0, 0)),        # w3 (bf16, padded N)
        pl.BlockSpec((1, n_pad), lambda i: (0, 0)),        # b3 (padded N)
    ]
    if has_bounds:
        args += [prep["offset"], prep["half_rng"]]
        in_specs += [pl.BlockSpec((1, n_var), lambda i: (0, 0)),
                     pl.BlockSpec((1, n_var), lambda i: (0, 0))]

    kernel = functools.partial(_psl_kernel, n_obj=n_obj, n_var=n_var,
                               has_bounds=has_bounds)
    out = pl.pallas_call(
        kernel,
        out_shape=jax.ShapeDtypeStruct((b_padded, n_var), jnp.float32),
        grid=(b_padded // tile_b,),
        in_specs=in_specs,
        out_specs=pl.BlockSpec((tile_b, n_var), lambda i: (i, 0)),
        compiler_params=pltpu.CompilerParams(
            dimension_semantics=("parallel",)),
    )(*args)
    return out[:B] if b_padded != B else out


def init_params(key, n_obj, hidden, n_var):
    """Deterministic parameter init (nn.Linear-style uniform ranges), f32."""
    ks = jax.random.split(key, 6)

    def lin(kw, kb, fan_in, fan_out):
        bound = 1.0 / jnp.sqrt(fan_in)
        # stored as [in, out] (transposed vs torch's [out, in]) => y = x @ W + b
        w = jax.random.uniform(kw, (fan_in, fan_out), jnp.float32, -bound, bound)
        b = jax.random.uniform(kb, (1, fan_out), jnp.float32, -bound, bound)
        return w, b

    w1, b1 = lin(ks[0], ks[1], n_obj, hidden)
    w2, b2 = lin(ks[2], ks[3], hidden, hidden)
    w3, b3 = lin(ks[4], ks[5], hidden, n_var)
    return {"w1": w1, "b1": b1, "w2": w2, "b2": b2, "w3": w3, "b3": b3}


def _reference(pref, params, lb=None, ub=None):
    """Pure-JAX f32 reference (matches the PyTorch module)."""
    h = jnp.maximum(pref @ params["w1"] + params["b1"], 0.0)
    h = jnp.maximum(h @ params["w2"] + params["b2"], 0.0)
    z = h @ params["w3"] + params["b3"]
    if lb is not None:
        return jax.nn.sigmoid(z) * (ub - lb) + lb
    return z


if __name__ == "__main__":
    # Small problem consistent with the module: n_obj objectives -> n_var vars.
    B, n_obj, hidden, n_var = 8, 3, 128, 10

    key = jax.random.PRNGKey(0)
    k_param, k_pref, k_pref2, k_pref3 = jax.random.split(key, 4)

    params = init_params(k_param, n_obj, hidden, n_var)

    # preference vectors on the simplex, shape [B, n_obj]
    pref = jax.random.uniform(k_pref, (B, n_obj), jnp.float32)
    pref = pref / jnp.sum(pref, axis=-1, keepdims=True)

    # problem bounds (the `'lb' in dir(problem)` branch)
    lb = jnp.zeros((1, n_var), jnp.float32)
    ub = jnp.ones((1, n_var), jnp.float32) * 2.0

    prep_bounded = prepare_psl(params, lb=lb, ub=ub)
    prep_raw = prepare_psl(params)

    # bounded branch (tanh-form sigmoid + rescale); bf16 MXU -> loosened tol
    out_bounded = simple_psl_forward(pref, prep_bounded)
    out_bounded = jax.block_until_ready(out_bounded)
    ref_bounded = _reference(pref, params, lb=lb, ub=ub)
    assert out_bounded.shape == (B, n_var)
    assert jnp.allclose(out_bounded, ref_bounded, atol=3e-2, rtol=3e-2)

    # unbounded branch (no Sigmoid, no rescale)
    out_raw = simple_psl_forward(pref, prep_raw)
    out_raw = jax.block_until_ready(out_raw)
    ref_raw = _reference(pref, params)
    assert out_raw.shape == (B, n_var)
    assert jnp.allclose(out_raw, ref_raw, atol=3e-2, rtol=3e-2)

    # batch >= 16: the wrapper forces >= 2 grid steps (v7x megacore path)
    B2 = 32
    pref2 = jax.random.uniform(k_pref2, (B2, n_obj), jnp.float32)
    pref2 = pref2 / jnp.sum(pref2, axis=-1, keepdims=True)
    out2 = jax.block_until_ready(simple_psl_forward(pref2, prep_bounded))
    ref2 = _reference(pref2, params, lb=lb, ub=ub)
    assert out2.shape == (B2, n_var)
    assert jnp.allclose(out2, ref2, atol=3e-2, rtol=3e-2)

    # ragged batch (not a multiple of 8) with a small explicit tile: exercises
    # batch padding + multi-step grid + padded-row slice-off.
    B3 = 13
    pref3 = jax.random.uniform(k_pref3, (B3, n_obj), jnp.float32)
    pref3 = pref3 / jnp.sum(pref3, axis=-1, keepdims=True)
    out3 = jax.block_until_ready(
        simple_psl_forward(pref3, prep_bounded, max_tile_b=8))
    ref3 = _reference(pref3, params, lb=lb, ub=ub)
    assert out3.shape == (B3, n_var)
    assert jnp.allclose(out3, ref3, atol=3e-2, rtol=3e-2)

    print("KERNEL_OK")
</pallas_src>

<mosaic_0001>
module attributes {stable_mosaic.version = 11 : i64} {
  func.func @_psl_kernel(%arg0: i32, %arg1: memref<8x3xf32, #tpu.memory_space<vmem>>, %arg2: memref<3x128xf32, #tpu.memory_space<vmem>>, %arg3: memref<1x128xf32, #tpu.memory_space<vmem>>, %arg4: memref<128x128xbf16, #tpu.memory_space<vmem>>, %arg5: memref<1x128xf32, #tpu.memory_space<vmem>>, %arg6: memref<128x128xbf16, #tpu.memory_space<vmem>>, %arg7: memref<1x128xf32, #tpu.memory_space<vmem>>, %arg8: memref<1x10xf32, #tpu.memory_space<vmem>>, %arg9: memref<1x10xf32, #tpu.memory_space<vmem>>, %arg10: memref<8x10xf32, #tpu.memory_space<vmem>>) attributes {dimension_semantics = [#tpu.dimension_semantics<parallel>], iteration_bounds = array<i64: 1>, scalar_prefetch = 0 : i64, scratch_operands = 0 : i64, tpu.core_type = #tpu.core_type<tc>, window_params = [{transform_indices = @transform_0, window_bounds = array<i64: 8, 3>}, {pipeline_mode = #tpu.pipeline_mode<synchronous>, transform_indices = @transform_1, window_bounds = array<i64: 3, 128>}, {pipeline_mode = #tpu.pipeline_mode<synchronous>, transform_indices = @transform_2, window_bounds = array<i64: 1, 128>}, {pipeline_mode = #tpu.pipeline_mode<synchronous>, transform_indices = @transform_3, window_bounds = array<i64: 128, 128>}, {pipeline_mode = #tpu.pipeline_mode<synchronous>, transform_indices = @transform_4, window_bounds = array<i64: 1, 128>}, {pipeline_mode = #tpu.pipeline_mode<synchronous>, transform_indices = @transform_5, window_bounds = array<i64: 128, 128>}, {pipeline_mode = #tpu.pipeline_mode<synchronous>, transform_indices = @transform_6, window_bounds = array<i64: 1, 128>}, {pipeline_mode = #tpu.pipeline_mode<synchronous>, transform_indices = @transform_7, window_bounds = array<i64: 1, 10>}, {pipeline_mode = #tpu.pipeline_mode<synchronous>, transform_indices = @transform_8, window_bounds = array<i64: 1, 10>}, {transform_indices = @transform_9, window_bounds = array<i64: 8, 10>}]} {
    %c0 = arith.constant 0 : index
    %c0_0 = arith.constant 0 : index
    %0 = vector.load %arg1[%c0, %c0_0] : memref<8x3xf32, #tpu.memory_space<vmem>>, vector<8x3xf32>
    %c0_1 = arith.constant 0 : index
    %c0_2 = arith.constant 0 : index
    %1 = vector.load %arg2[%c0_1, %c0_2] : memref<3x128xf32, #tpu.memory_space<vmem>>, vector<3x128xf32>
    %2 = vector.extract_strided_slice %0 {offsets = [0, 0], sizes = [8, 1], strides = [1, 1]} : vector<8x3xf32> to vector<8x1xf32>
    %3 = vector.extract_strided_slice %1 {offsets = [0, 0], sizes = [1, 128], strides = [1, 1]} : vector<3x128xf32> to vector<1x128xf32>
    %4 = vector.broadcast %2 : vector<8x1xf32> to vector<8x128xf32>
    %5 = vector.broadcast %3 : vector<1x128xf32> to vector<8x128xf32>
    %6 = arith.mulf %4, %5 : vector<8x128xf32>
    %c0_3 = arith.constant 0 : index
    %c0_4 = arith.constant 0 : index
    %7 = vector.load %arg3[%c0_3, %c0_4] : memref<1x128xf32, #tpu.memory_space<vmem>>, vector<1x128xf32>
    %8 = vector.broadcast %7 : vector<1x128xf32> to vector<8x128xf32>
    %9 = arith.addf %6, %8 : vector<8x128xf32>
    %10 = vector.extract_strided_slice %0 {offsets = [0, 1], sizes = [8, 1], strides = [1, 1]} : vector<8x3xf32> to vector<8x1xf32>
    %11 = vector.extract_strided_slice %1 {offsets = [1, 0], sizes = [1, 128], strides = [1, 1]} : vector<3x128xf32> to vector<1x128xf32>
    %12 = vector.broadcast %10 : vector<8x1xf32> to vector<8x128xf32>
    %13 = vector.broadcast %11 : vector<1x128xf32> to vector<8x128xf32>
    %14 = arith.mulf %12, %13 : vector<8x128xf32>
    %15 = arith.addf %9, %14 : vector<8x128xf32>
    %16 = vector.extract_strided_slice %0 {offsets = [0, 2], sizes = [8, 1], strides = [1, 1]} : vector<8x3xf32> to vector<8x1xf32>
    %17 = vector.extract_strided_slice %1 {offsets = [2, 0], sizes = [1, 128], strides = [1, 1]} : vector<3x128xf32> to vector<1x128xf32>
    %18 = vector.broadcast %16 : vector<8x1xf32> to vector<8x128xf32>
    %19 = vector.broadcast %17 : vector<1x128xf32> to vector<8x128xf32>
    %20 = arith.mulf %18, %19 : vector<8x128xf32>
    %21 = arith.addf %15, %20 : vector<8x128xf32>
    %cst = arith.constant 0.000000e+00 : f32
    %22 = vector.broadcast %cst : f32 to vector<8x128xf32>
    %23 = arith.maximumf %21, %22 : vector<8x128xf32>
    %24 = arith.truncf %23 : vector<8x128xf32> to vector<8x128xbf16>
    %c0_5 = arith.constant 0 : index
    %c0_6 = arith.constant 0 : index
    %25 = vector.load %arg4[%c0_5, %c0_6] : memref<128x128xbf16, #tpu.memory_space<vmem>>, vector<128x128xbf16>
    %cst_7 = arith.constant dense<0.000000e+00> : vector<8x128xf32>
    %26 = tpu.matmul %24, %25, %cst_7 {dimension_numbers = #tpu.dot_dimension_numbers<[1], [0], [0], [1], [0, 0, 1, 1], [], []>} : vector<8x128xbf16>, vector<128x128xbf16>, vector<8x128xf32> -> vector<8x128xf32>
    %c0_8 = arith.constant 0 : index
    %c0_9 = arith.constant 0 : index
    %27 = vector.load %arg5[%c0_8, %c0_9] : memref<1x128xf32, #tpu.memory_space<vmem>>, vector<1x128xf32>
    %28 = vector.broadcast %27 : vector<1x128xf32> to vector<8x128xf32>
    %29 = arith.addf %26, %28 : vector<8x128xf32>
    %cst_10 = arith.constant 0.000000e+00 : f32
    %30 = vector.broadcast %cst_10 : f32 to vector<8x128xf32>
    %31 = arith.maximumf %29, %30 : vector<8x128xf32>
    %32 = arith.truncf %31 : vector<8x128xf32> to vector<8x128xbf16>
    %c0_11 = arith.constant 0 : index
    %c0_12 = arith.constant 0 : index
    %33 = vector.load %arg6[%c0_11, %c0_12] : memref<128x128xbf16, #tpu.memory_space<vmem>>, vector<128x128xbf16>
    %cst_13 = arith.constant dense<0.000000e+00> : vector<8x128xf32>
    %34 = tpu.matmul %32, %33, %cst_13 {dimension_numbers = #tpu.dot_dimension_numbers<[1], [0], [0], [1], [0, 0, 1, 1], [], []>} : vector<8x128xbf16>, vector<128x128xbf16>, vector<8x128xf32> -> vector<8x128xf32>
    %c0_14 = arith.constant 0 : index
    %c0_15 = arith.constant 0 : index
    %35 = vector.load %arg7[%c0_14, %c0_15] : memref<1x128xf32, #tpu.memory_space<vmem>>, vector<1x128xf32>
    %36 = vector.broadcast %35 : vector<1x128xf32> to vector<8x128xf32>
    %37 = arith.addf %34, %36 : vector<8x128xf32>
    %38 = vector.extract_strided_slice %37 {offsets = [0, 0], sizes = [8, 10], strides = [1, 1]} : vector<8x128xf32> to vector<8x10xf32>
    %cst_16 = arith.constant 5.000000e-01 : f32
    %39 = vector.broadcast %cst_16 : f32 to vector<8x10xf32>
    %40 = arith.mulf %39, %38 : vector<8x10xf32>
    %41 = math.tanh %40 : vector<8x10xf32>
    %c0_17 = arith.constant 0 : index
    %c0_18 = arith.constant 0 : index
    %42 = vector.load %arg9[%c0_17, %c0_18] : memref<1x10xf32, #tpu.memory_space<vmem>>, vector<1x10xf32>
    %43 = vector.broadcast %42 : vector<1x10xf32> to vector<8x10xf32>
    %44 = arith.mulf %41, %43 : vector<8x10xf32>
    %c0_19 = arith.constant 0 : index
    %c0_20 = arith.constant 0 : index
    %45 = vector.load %arg8[%c0_19, %c0_20] : memref<1x10xf32, #tpu.memory_space<vmem>>, vector<1x10xf32>
    %46 = vector.broadcast %45 : vector<1x10xf32> to vector<8x10xf32>
    %47 = arith.addf %44, %46 : vector<8x10xf32>
    %c0_21 = arith.constant 0 : index
    %c0_22 = arith.constant 0 : index
    %48 = vector.load %arg10[%c0_21, %c0_22] : memref<8x10xf32, #tpu.memory_space<vmem>>, vector<8x10xf32>
    tpu.vector_store %arg10[%c0_21, %c0_22], %47 {strides = array<i32>} : memref<8x10xf32, #tpu.memory_space<vmem>>, vector<8x10xf32>,
    return
  }
  func.func @transform_0(%arg0: i32) -> (i32, i32) {
    %c0_i32 = arith.constant 0 : i32
    %c0_i32_0 = arith.constant 0 : i32
    return %arg0, %c0_i32 : i32, i32
  }
  func.func @transform_1(%arg0: i32) -> (i32, i32) {
    %c0_i32 = arith.constant 0 : i32
    %c0_i32_0 = arith.constant 0 : i32
    %c0_i32_1 = arith.constant 0 : i32
    return %c0_i32, %c0_i32_0 : i32, i32
  }
  func.func @transform_2(%arg0: i32) -> (i32, i32) {
    %c0_i32 = arith.constant 0 : i32
    %c0_i32_0 = arith.constant 0 : i32
    %c0_i32_1 = arith.constant 0 : i32
    return %c0_i32, %c0_i32_0 : i32, i32
  }
  func.func @transform_3(%arg0: i32) -> (i32, i32) {
    %c0_i32 = arith.constant 0 : i32
    %c0_i32_0 = arith.constant 0 : i32
    %c0_i32_1 = arith.constant 0 : i32
    return %c0_i32, %c0_i32_0 : i32, i32
  }
  func.func @transform_4(%arg0: i32) -> (i32, i32) {
    %c0_i32 = arith.constant 0 : i32
    %c0_i32_0 = arith.constant 0 : i32
    %c0_i32_1 = arith.constant 0 : i32
    return %c0_i32, %c0_i32_0 : i32, i32
  }
  func.func @transform_5(%arg0: i32) -> (i32, i32) {
    %c0_i32 = arith.constant 0 : i32
    %c0_i32_0 = arith.constant 0 : i32
    %c0_i32_1 = arith.constant 0 : i32
    return %c0_i32, %c0_i32_0 : i32, i32
  }
  func.func @transform_6(%arg0: i32) -> (i32, i32) {
    %c0_i32 = arith.constant 0 : i32
    %c0_i32_0 = arith.constant 0 : i32
    %c0_i32_1 = arith.constant 0 : i32
    return %c0_i32, %c0_i32_0 : i32, i32
  }
  func.func @transform_7(%arg0: i32) -> (i32, i32) {
    %c0_i32 = arith.constant 0 : i32
    %c0_i32_0 = arith.constant 0 : i32
    %c0_i32_1 = arith.constant 0 : i32
    return %c0_i32, %c0_i32_0 : i32, i32
  }
  func.func @transform_8(%arg0: i32) -> (i32, i32) {
    %c0_i32 = arith.constant 0 : i32
    %c0_i32_0 = arith.constant 0 : i32
    %c0_i32_1 = arith.constant 0 : i32
    return %c0_i32, %c0_i32_0 : i32, i32
  }
  func.func @transform_9(%arg0: i32) -> (i32, i32) {
    %c0_i32 = arith.constant 0 : i32
    %c0_i32_0 = arith.constant 0 : i32
    return %arg0, %c0_i32 : i32, i32
  }
}

</mosaic_0001>

<bundles_post_ra>
// kernel: tpu_custom_call.1
= control target key start
LH: loop header
LB: loop body
LE: loop exit
PB: predicated region body
PF: predicated region fallthrough
CT: control target
= control target key end

     0   :  { %14 = vsyncpa [#allocation3], 0  ;;  %s649_s0 = inlined_call_operand.vmem [shape: f32[8,3], index: 0, kind: input, shape index: {}]   ;;  %s650_s1 = inlined_call_operand.vmem [shape: f32[3,128], index: 1, kind: input, shape index: {}]   ;;  %s651_s2 = inlined_call_operand.vmem [shape: f32[1,128], index: 2, kind: input, shape index: {}]   ;;  %s652_s3 = inlined_call_operand.hbm [shape: bf16[128,128], index: 3, kind: input, shape index: {}]   ;;  %s653_s4 = inlined_call_operand.vmem [shape: f32[1,128], index: 4, kind: input, shape index: {}]   ;;  %s654_s5 = inlined_call_operand.hbm [shape: bf16[128,128], index: 5, kind: input, shape index: {}]   ;;  %s655_s6 = inlined_call_operand.vmem [shape: f32[1,128], index: 6, kind: input, shape index: {}]   ;;  %s656_s7 = inlined_call_operand.vmem [shape: f32[1,10], index: 7, kind: input, shape index: {}]   ;;  %s657_s8 = inlined_call_operand.vmem [shape: f32[1,10], index: 8, kind: input, shape index: {}]   ;;  %s658_s9 = inlined_call_operand.hbm [shape: f32[8,10], index: 9, kind: output, shape index: {}]  }
   0x1   :  { %15 = vsyncpa [#allocation6], 0 }
   0x2   :  { %16 = vsyncpa [#allocation4], 0  ;;  %s541_s30 = smov [#allocation2]  }
   0x3   :  { %s28_s10 = sshll.u32 %s541_s30, 4  ;;  %s29_s10 = int_to_ptr.vmem [resolvable:$true] %s28_s10 }
   0x4   :  { %s483_s11 = scalar_lea.vmem %s29_s10, 1024  ;;  %p488_p1 = scmp.lt.s32.totalorder %s29_s10, %s29_s10 }
   0x5   :  { %p484_p0 = scmp.ne.s32.totalorder %s29_s10, %s483_s11  ;;  %p489_p2 = scmp.lt.s32.totalorder %s483_s11, %s483_s11 }
   0x7   :  { %p490_p3 = por %p489_p2, %p488_p1 }
   0x9   :  { %p491_p4 = pnand %p490_p3, %p484_p0 }
   0xb   :  { %494 = shalt.err (!%p491_p4)
}
   0xc   :  { %s542_s12 = smov 64   ;;  %s543_s13 = smov 4  }
   0xd   :  { %34 = dma.hbm_to_vmem [thread:$0]  %s652_s3, 1024, %s29_s10, [#allocation3], %s542_s12, %s542_s12, %s543_s13  }
   0xe   :  { %s544_s16 = smov [#allocation5]  }
   0xf   :  { %s42_s17 = sshll.u32 %s544_s16, 4  ;;  %s43_s17 = int_to_ptr.vmem [resolvable:$true] %s42_s17 }
  0x10   :  { %s503_s18 = scalar_lea.vmem %s43_s17, 1024  ;;  %p508_p6 = scmp.lt.s32.totalorder %s43_s17, %s43_s17 }
  0x11   :  { %p504_p5 = scmp.ne.s32.totalorder %s43_s17, %s503_s18  ;;  %p509_p7 = scmp.lt.s32.totalorder %s503_s18, %s503_s18 }
  0x13   :  { %p510_p8 = por %p509_p7, %p508_p6 }
  0x15   :  { %p511_p9 = pnand %p510_p8, %p504_p5 }
  0x17   :  { %514 = shalt.err (!%p511_p9)
}
  0x18   :  { %48 = dma.hbm_to_vmem [thread:$0]  %s654_s5, 1024, %s43_s17, [#allocation6], %s542_s12, %s542_s12, %s543_s13  }
  0x19   :  { %535 = dma.done.wait [#allocation3], 1024  }
  0x1a   :  { %536 = vsyncadd [#allocation3], 4294966272 }
  0x1b   :  { %537 = dma.done.wait [#allocation6], 1024  }
  0x1c   :  { %538 = vsyncadd [#allocation6], 4294966272  ;;  %v545_v0 = vmov 0   ;;  %v546_v1 = vmov 2   ;;  %v547_v2 = vmov 0.0   ;;  %v62_v3 = vld [vmem:[%s649_s0] sm:$0xff]  ;;  %v69_v19 = vlaneseq }
  0x1d   :  { %453 = vset.pattern.permute.xlu0 %v545_v0  ;;  %455 = vset.pattern.permute.xlu1 %v546_v1  ;;  %v457_v4 = vld [vmem:[#allocation2 + $0x38] sm:$0xff]   ;;  %v458_v5 = vld [vmem:[#allocation2 + $0x30] sm:$0xff]   ;;  %v548_v6 = vmov 1   ;;  %v459_v7 = vld [vmem:[#allocation2 + $0x28] sm:$0xff]   ;;  %vm549_vm0 = vmmov 0   ;;  %s550_s29 = smov [#allocation7]  }
  0x1e   :  { %403 = vmatprep.subr.bf16.mxu0 %v547_v2  ;;  %423 = vmatprep.subr.bf16.mxu1 %v547_v2  ;;  %v460_v8 = vld [vmem:[#allocation2 + $0x20] sm:$0xff]   ;;  %v465_v9 = vld [vmem:[#allocation5 + $0x38] sm:$0xff]   ;;  %v466_v10 = vld [vmem:[#allocation5 + $0x30] sm:$0xff]   ;;  %v70_v20 = vshrl.u32 %v69_v19, 7  ;;  %s354_s30 = sshll.u32 %s550_s29, 4  ;;  %vm346_vm1 = vcmask 80896   ;;  %s355_s30 = int_to_ptr.vmem [resolvable:$true] %s354_s30 }
  0x1f   :  { %66 = vperm.xlu0 %453, %v62_v3   ;;  %93 = vperm.xlu1 %455, %v62_v3   ;;  %v461_v11 = vld [vmem:[#allocation2 + $0x18] sm:$0xff]   ;;  %v467_v12 = vld [vmem:[#allocation5 + $0x28] sm:$0xff]   ;;  %v462_v13 = vld [vmem:[#allocation2 + $0x10] sm:$0xff]   ;;  %p520_p11 = scmp.lt.s32.totalorder %s355_s30, %s355_s30 }
  0x20   :  { %404 = vmatpush3.bf16.msra.mxu0 %v457_v4  ;;  %419 = vmatprep.mubr.msk.bf16.mxu0 %vm549_vm0, %v547_v2  ;;  %v468_v14 = vld [vmem:[#allocation5 + $0x20] sm:$0xff]   ;;  %v463_v15 = vld [vmem:[#allocation2 + $0x8] sm:$0xff]   ;;  %v469_v16 = vld [vmem:[#allocation5 + $0x18] sm:$0xff]   ;;  %v71_v21 = vsub.s32 0, %v70_v20  ;;  %v88_v24 = vsub.s32 1, %v70_v20  ;;  %v98_v25 = vsub.s32 2, %v70_v20 }
  0x21   :  { %405 = vmatprep.subr.bf16.mxu0 %v547_v2  ;;  %439 = vmatprep.mubr.msk.bf16.mxu1 %vm549_vm0, %v547_v2  ;;  %v464_v17 = vld [vmem:[#allocation2] sm:$0xff]   ;;  %v470_v18 = vld [vmem:[#allocation5 + $0x10] sm:$0xff]   ;;  %v471_v40 = vld [vmem:[#allocation5 + $0x8] sm:$0xff]  }
  0x22   :  { %424 = vmatpush3.bf16.msra.mxu1 %v465_v9  ;;  %v63_v22 = vld [vmem:[%s650_s1] sm:$0x7] }
  0x23   :  { %454 = vset.pattern.permute.xlu0 %v548_v6  ;;  %425 = vmatprep.subr.bf16.mxu1 %v547_v2  ;;  %v72_v23 = vrot.slane %v63_v22, %v71_v21  ;;  %v89_v28 = vrot.slane %v63_v22, %v88_v24  ;;  %v99_v29 = vrot.slane %v63_v22, %v98_v25  ;;  %v364_v30 = vld [vmem:[%s651_s2] ss:$0 sm:$0xff] }
  0x24   :  { %83 = vperm.xlu0 %454, %v62_v3   ;;  %406 = vmatpush3.bf16.msra.mxu0 %v458_v5  ;;  %v472_v41 = vld [vmem:[#allocation5] sm:$0xff]  }
  0x25   :  { %407 = vmatprep.subr.bf16.mxu0 %v547_v2  ;;  %v365_v42 = vld [vmem:[%s653_s4] ss:$0 sm:$0xff] }
  0x26   :  { %426 = vmatpush3.bf16.msra.mxu1 %v466_v10  ;;  %v374_v50 = vld [vmem:[%s655_s6] ss:$0 sm:$0xff]  ;;  %s515_s6 = scalar_lea.vmem %s355_s30, 128 }
  0x27   :  { %427 = vmatprep.subr.bf16.mxu1 %v547_v2  ;;  %v383_v57 = vld [vmem:[%s657_s8] ss:$0 sm:$0xff]  ;;  %p516_p10 = scmp.ne.s32.totalorder %s355_s30, %s515_s6  ;;  %p521_p12 = scmp.lt.s32.totalorder %s515_s6, %s515_s6 }
  0x28   :  { %456 = vset.pattern.permute.xlu0 %v546_v1  ;;  %408 = vmatpush3.bf16.msra.mxu0 %v459_v7  ;;  %v384_v59 = vld [vmem:[%s656_s7] ss:$0 sm:$0xff] }
  0x29   :  { %409 = vmatprep.subr.bf16.mxu0 %v547_v2  ;;  %p522_p13 = por %p521_p12, %p520_p11 }
  0x2a   :  { %428 = vmatpush3.bf16.msra.mxu1 %v467_v12 }
  0x2b   :  { %429 = vmatprep.subr.bf16.mxu1 %v547_v2  ;;  %p523_p0 = pnand %p522_p13, %p516_p10 }
  0x2c   :  { %410 = vmatpush3.bf16.msra.mxu0 %v460_v8 }
  0x2d   :  { %411 = vmatprep.subr.bf16.mxu0 %v547_v2 }
  0x2e   :  { %430 = vmatpush3.bf16.msra.mxu1 %v468_v14 }
  0x2f   :  { %431 = vmatprep.subr.bf16.mxu1 %v547_v2 }
  0x30   :  { %412 = vmatpush3.bf16.msra.mxu0 %v461_v11 }
  0x31   :  { %413 = vmatprep.subr.bf16.mxu0 %v547_v2 }
  0x32   :  { %432 = vmatpush3.bf16.msra.mxu1 %v469_v16 }
  0x33   :  { %433 = vmatprep.subr.bf16.mxu1 %v547_v2 }
  0x34   :  { %414 = vmatpush3.bf16.msra.mxu0 %v462_v13 }
  0x35   :  { %415 = vmatprep.subr.bf16.mxu0 %v547_v2 }
  0x36   :  { %434 = vmatpush3.bf16.msra.mxu1 %v470_v18 }
  0x37   :  { %435 = vmatprep.subr.bf16.mxu1 %v547_v2 }
  0x38   :  { %416 = vmatpush3.bf16.msra.mxu0 %v463_v15 }
  0x39   :  { %417 = vmatprep.subr.bf16.mxu0 %v547_v2 }
  0x3a   :  { %436 = vmatpush3.bf16.msra.mxu1 %v471_v40 }
  0x3b   :  { %437 = vmatprep.subr.bf16.mxu1 %v547_v2 }
  0x3c   :  { %418 = vmatpush3.bf16.msra.mxu0 %v464_v17 }
  0x3e   :  { %438 = vmatpush3.bf16.msra.mxu1 %v472_v41 }
  0x9a   :  { %v67_v26 = vpop.permute.xlu0 %66  ;;  %v94_v31 = vpop.permute.xlu1 %93 }
  0x9b   :  { %v73_v27 = vmul.f32 %v72_v23, %v67_v26  ;;  %v100_v35 = vmul.f32 %v99_v29, %v94_v31 }
  0x9d   :  { %v81_v33 = vadd.f32 %v364_v30, %v73_v27 }
  0x9f   :  { %v84_v32 = vpop.permute.xlu0 %83 }
  0xa0   :  { %v90_v34 = vmul.f32 %v89_v28, %v84_v32 }
  0xa2   :  { %v91_v36 = vadd.f32 %v90_v34, %v81_v33 }
  0xa4   :  { %v101_v37 = vadd.f32 %v100_v35, %v91_v36 }
  0xa6   :  { %v102_v38 = vmax.f32 %v101_v37, 0.0 }
  0xa8   :  { %v103_v39 = vpack.c.bf16 %v102_v38, %v102_v38 }
  0xaa   :  { %420 = vmatmul.mubr.bf16.vlgmr.msra.gmra.mxu0 %v103_v39 }
 0x16a   :  { %v209_v43 = vpop.f32.mrf.mxu0 }
 0x16b   :  { %v210_v44 = vadd.f32 %v365_v42, %v209_v43 }
 0x16c   :  { %v421_v45 = vpop.f32.mrf.mxu0 }
 0x16d   :  { %v215_v46 = vmax.f32 %v210_v44, 0.0 }
 0x16e   :  { %v212_v47 = vpop.f32.mrf.mxu0 }
 0x16f   :  { %v216_v48 = vpack.c.bf16 %v215_v46, %v215_v46 }
 0x170   :  { %v422_v49 = vpop.f32.mrf.mxu0 }
 0x171   :  { %440 = vmatmul.mubr.bf16.vlgmr.msra.gmra.mxu1 %v216_v48 }
 0x231   :  { %v322_v51 = vpop.f32.mrf.mxu1 }
 0x232   :  { %v323_v52 = vadd.f32 %v374_v50, %v322_v51 }
 0x233   :  { %v441_v53 = vpop.f32.mrf.mxu1 }
 0x234   :  { %v328_v54 = vmul.f32 0.5, %v323_v52 }
 0x235   :  { %v325_v55 = vpop.f32.mrf.mxu1 }
 0x236   :  { %473 = vtanh.f32 %v328_v54 }
 0x237   :  { %v442_v56 = vpop.f32.mrf.mxu1 }
 0x243   :  { %v474_v58 = vpop.eup %473 }
 0x244   :  { %v337_v60 = vmul.f32 %v474_v58, %v383_v57 }
 0x246   :  { %v345_v61 = vadd.f32 %v384_v59, %v337_v60 }
 0x248   :  { %347 = vst.msk [vmem:[#allocation7] sm:$0xff] %vm346_vm1, %v345_v61 }
 0x249   :  { %526 = shalt.err (!%p523_p0)
}
 0x24a   :  { %357 = dma.vmem_to_hbm [thread:$0]  %s355_s30, 128, %s658_s9, [#allocation4]  }
 0x24b   :  { %539 = dma.done.wait [#allocation4], 128  }
 0x24c   :  { %540 = vsyncadd [#allocation4], 4294967168 }
 0x24d   :  { %361 = vsyncpa [#allocation3], 1 }
 0x24e   :  { %362 = vsyncpa [#allocation6], 1 }
 0x24f   :  { %363 = vsyncpa [#allocation4], 1 }

</bundles_post_ra>
